<compile_context>
chip_gen: v7x
topology: tpu7x:2x2x1
jax: 0.10.0
libtpu: 0.0.40
codegen_flags: <defaults>
</compile_context>

<pallas_src>
import functools

import jax
import jax.numpy as jnp
from jax.experimental import pallas as pl
from jax.experimental.pallas import tpu as pltpu


# ----------------------------------------------------------------------------
# Tile selection helper
# ----------------------------------------------------------------------------

def _pick_tile(dim, preferred, align):
    """Largest tile <= preferred that divides dim and respects TPU alignment;
    falls back to the full dim (always legal for BlockSpec)."""
    if dim <= preferred:
        return dim
    t = preferred
    while t >= align:
        if dim % t == 0:
            return t
        t //= 2
    return dim


# ----------------------------------------------------------------------------
# Pallas kernels
# ----------------------------------------------------------------------------

def _dense_kernel(x_ref, w_ref, b_ref, o_ref, acc_ref, *, activation):
    # x: (tm, tk)  w: (tk, tn)  b: (1, tn)  -> o: (tm, tn), acc in f32 VMEM.
    k = pl.program_id(2)

    @pl.when(k == 0)
    def _():
        acc_ref[...] = jnp.zeros_like(acc_ref)

    acc_ref[...] += jnp.dot(
        x_ref[...].astype(jnp.bfloat16),
        w_ref[...].astype(jnp.bfloat16),
        preferred_element_type=jnp.float32,
    )

    @pl.when(k == pl.num_programs(2) - 1)
    def _():
        y = acc_ref[...] + b_ref[...]
        if activation == "gelu":
            y = jax.nn.gelu(y, approximate=True)
        o_ref[...] = y.astype(o_ref.dtype)


def _dense_res_ln_kernel(x_ref, w_ref, b_ref, res_ref, g_ref, be_ref,
                         o_ref, acc_ref, *, eps):
    # Fused: o = LayerNorm(residual + (x @ w + b)); K-tiled, full output width.
    k = pl.program_id(1)

    @pl.when(k == 0)
    def _():
        acc_ref[...] = jnp.zeros_like(acc_ref)

    acc_ref[...] += jnp.dot(
        x_ref[...].astype(jnp.bfloat16),
        w_ref[...].astype(jnp.bfloat16),
        preferred_element_type=jnp.float32,
    )

    @pl.when(k == pl.num_programs(1) - 1)
    def _():
        y = acc_ref[...] + b_ref[...] + res_ref[...]
        mu = jnp.mean(y, axis=-1, keepdims=True)
        var = jnp.maximum(jnp.mean(y * y, axis=-1, keepdims=True) - mu * mu, 0.0)
        inv = jax.lax.rsqrt(var + eps)
        o_ref[...] = ((y - mu) * inv * g_ref[...] + be_ref[...]).astype(o_ref.dtype)


def _layernorm_kernel(x_ref, g_ref, b_ref, o_ref, *, eps):
    x = x_ref[...]
    mu = jnp.mean(x, axis=-1, keepdims=True)
    var = jnp.maximum(jnp.mean(x * x, axis=-1, keepdims=True) - mu * mu, 0.0)
    inv = jax.lax.rsqrt(var + eps)
    o_ref[...] = (x - mu) * inv * g_ref[...] + b_ref[...]


def _attention_kernel(qkv_ref, o_ref, *, heads, d_head, scale):
    # One batch element per grid step.  qkv block: (1, S, 3*D), heads sliced
    # on lanes (Q | K | V each occupy D lanes).  Output written as one
    # lane-dense (S, D) store with heads concatenated -> merged layout for free.
    d_model = heads * d_head
    outs = []
    for h in range(heads):
        q = qkv_ref[0, :, h * d_head:(h + 1) * d_head].astype(jnp.bfloat16)
        k = qkv_ref[0, :, d_model + h * d_head:d_model + (h + 1) * d_head].astype(jnp.bfloat16)
        v = qkv_ref[0, :, 2 * d_model + h * d_head:2 * d_model + (h + 1) * d_head].astype(jnp.bfloat16)

        # q @ k^T without materializing a transpose (contract on last dims).
        s = jax.lax.dot_general(
            q, k, (((1,), (1,)), ((), ())),
            preferred_element_type=jnp.float32) * scale
        s = s - jnp.max(s, axis=-1, keepdims=True)
        p = jnp.exp(s)
        p = p * pl.reciprocal(jnp.sum(p, axis=-1, keepdims=True), approx=True)

        outs.append(jax.lax.dot_general(
            p.astype(jnp.bfloat16), v, (((1,), (0,)), ((), ())),
            preferred_element_type=jnp.float32))

    o_ref[0] = jnp.concatenate(outs, axis=-1)


def _softmax_kernel(x_ref, o_ref):
    x = x_ref[...]
    x = x - jnp.max(x, axis=-1, keepdims=True)
    e = jnp.exp(x)
    o_ref[...] = e * pl.reciprocal(jnp.sum(e, axis=-1, keepdims=True), approx=True)


def _cross_entropy_kernel(logits_ref, labels_ref, o_ref, acc_ref, *, n_rows):
    # Streams (tm, V) row tiles; accumulates sum-of-NLL in a (1,1) VMEM scratch.
    i = pl.program_id(0)

    @pl.when(i == 0)
    def _():
        acc_ref[...] = jnp.zeros_like(acc_ref)

    logits = logits_ref[...]
    labels = labels_ref[...]
    m = jnp.max(logits, axis=-1, keepdims=True)
    lse = jnp.log(jnp.sum(jnp.exp(logits - m), axis=-1, keepdims=True)) + m
    ids = jax.lax.broadcasted_iota(jnp.int32, logits.shape, 1)
    picked = jnp.sum(jnp.where(ids == labels, logits, 0.0), axis=-1, keepdims=True)
    acc_ref[...] += jnp.sum(lse - picked, keepdims=True)

    @pl.when(i == pl.num_programs(0) - 1)
    def _():
        o_ref[...] = acc_ref[...] * (1.0 / n_rows)


# ----------------------------------------------------------------------------
# Wrappers around pallas_call
# ----------------------------------------------------------------------------

def pallas_dense(x, w, b, activation=None, *, tm=256, tn=512, tk=512):
    M, K = x.shape
    N = w.shape[1]
    tm = _pick_tile(M, tm, 8)
    tn = _pick_tile(N, tn, 128)
    tk = _pick_tile(K, tk, 128)
    kernel = functools.partial(_dense_kernel, activation=activation)
    return pl.pallas_call(
        kernel,
        out_shape=jax.ShapeDtypeStruct((M, N), jnp.float32),
        grid=(M // tm, N // tn, K // tk),
        in_specs=[
            pl.BlockSpec((tm, tk), lambda i, j, k: (i, k)),
            pl.BlockSpec((tk, tn), lambda i, j, k: (k, j)),
            pl.BlockSpec((1, tn), lambda i, j, k: (0, j)),
        ],
        out_specs=pl.BlockSpec((tm, tn), lambda i, j, k: (i, j)),
        scratch_shapes=[pltpu.VMEM((tm, tn), jnp.float32)],
        compiler_params=pltpu.CompilerParams(
            dimension_semantics=("parallel", "parallel", "arbitrary")),
    )(x, w, b.reshape(1, N))


def pallas_dense_residual_ln(x, w, b, residual, gamma, beta,
                             eps=1e-12, *, tm=256, tk=512):
    # o = LayerNorm(residual + x @ w + b); output width N kept whole so the LN
    # row statistics can be computed in the matmul epilogue.
    M, K = x.shape
    N = w.shape[1]
    tm = _pick_tile(M, tm, 8)
    tk = _pick_tile(K, tk, 128)
    kernel = functools.partial(_dense_res_ln_kernel, eps=eps)
    return pl.pallas_call(
        kernel,
        out_shape=jax.ShapeDtypeStruct((M, N), jnp.float32),
        grid=(M // tm, K // tk),
        in_specs=[
            pl.BlockSpec((tm, tk), lambda i, k: (i, k)),
            pl.BlockSpec((tk, N), lambda i, k: (k, 0)),
            pl.BlockSpec((1, N), lambda i, k: (0, 0)),
            pl.BlockSpec((tm, N), lambda i, k: (i, 0)),
            pl.BlockSpec((1, N), lambda i, k: (0, 0)),
            pl.BlockSpec((1, N), lambda i, k: (0, 0)),
        ],
        out_specs=pl.BlockSpec((tm, N), lambda i, k: (i, 0)),
        scratch_shapes=[pltpu.VMEM((tm, N), jnp.float32)],
        compiler_params=pltpu.CompilerParams(
            dimension_semantics=("parallel", "arbitrary")),
    )(x, w, b.reshape(1, N), residual, gamma.reshape(1, N), beta.reshape(1, N))


def pallas_layernorm(x, gamma, beta, eps=1e-12, *, tm=1024):
    M, D = x.shape
    tm = _pick_tile(M, tm, 8)
    kernel = functools.partial(_layernorm_kernel, eps=eps)
    return pl.pallas_call(
        kernel,
        out_shape=jax.ShapeDtypeStruct((M, D), jnp.float32),
        grid=(M // tm,),
        in_specs=[
            pl.BlockSpec((tm, D), lambda i: (i, 0)),
            pl.BlockSpec((1, D), lambda i: (0, 0)),
            pl.BlockSpec((1, D), lambda i: (0, 0)),
        ],
        out_specs=pl.BlockSpec((tm, D), lambda i: (i, 0)),
        compiler_params=pltpu.CompilerParams(dimension_semantics=("parallel",)),
    )(x, gamma.reshape(1, D), beta.reshape(1, D))


def pallas_attention(qkv, *, heads, scale):
    # qkv: (B, S, 3*D) -> context (B, S, D); heads handled inside the kernel.
    B, S, three_d = qkv.shape
    D = three_d // 3
    d_head = D // heads
    kernel = functools.partial(_attention_kernel, heads=heads, d_head=d_head,
                               scale=scale)
    return pl.pallas_call(
        kernel,
        out_shape=jax.ShapeDtypeStruct((B, S, D), jnp.float32),
        grid=(B,),
        in_specs=[pl.BlockSpec((1, S, three_d), lambda b: (b, 0, 0))],
        out_specs=pl.BlockSpec((1, S, D), lambda b: (b, 0, 0)),
        compiler_params=pltpu.CompilerParams(dimension_semantics=("parallel",)),
    )(qkv)


def pallas_softmax(x, *, tm=512):
    M, V = x.shape
    tm = _pick_tile(M, tm, 8)
    return pl.pallas_call(
        _softmax_kernel,
        out_shape=jax.ShapeDtypeStruct((M, V), jnp.float32),
        grid=(M // tm,),
        in_specs=[pl.BlockSpec((tm, V), lambda i: (i, 0))],
        out_specs=pl.BlockSpec((tm, V), lambda i: (i, 0)),
        compiler_params=pltpu.CompilerParams(dimension_semantics=("parallel",)),
    )(x)


def pallas_cross_entropy(logits, labels, *, tm=256):
    M, V = logits.shape
    tm = _pick_tile(M, tm, 8)
    kernel = functools.partial(_cross_entropy_kernel, n_rows=float(M))
    out = pl.pallas_call(
        kernel,
        out_shape=jax.ShapeDtypeStruct((1, 1), jnp.float32),
        grid=(M // tm,),
        in_specs=[
            pl.BlockSpec((tm, V), lambda i: (i, 0)),
            pl.BlockSpec((tm, 1), lambda i: (i, 0)),
        ],
        out_specs=pl.BlockSpec((1, 1), lambda i: (0, 0)),
        scratch_shapes=[pltpu.VMEM((1, 1), jnp.float32)],
        compiler_params=pltpu.CompilerParams(dimension_semantics=("arbitrary",)),
    )(logits, labels.reshape(M, 1).astype(jnp.int32))
    return out[0, 0]


# ----------------------------------------------------------------------------
# Model: small synthetic BERT encoder + classifier head
# ----------------------------------------------------------------------------

def init_params(key, *, vocab, hidden, heads, layers, intermediate, max_pos):
    std = 0.02

    def norm(k, shape):
        return jax.random.normal(k, shape, jnp.float32) * std

    keys = jax.random.split(key, 4 + layers)
    params = {
        "word_emb": norm(keys[0], (vocab, hidden)),
        "pos_emb": norm(keys[1], (max_pos, hidden)),
        "type_emb": norm(keys[2], (2, hidden)),
        "emb_ln_g": jnp.ones((hidden,), jnp.float32),
        "emb_ln_b": jnp.zeros((hidden,), jnp.float32),
        "classify_w": norm(keys[3], (hidden, vocab)),
        "classify_b": jnp.zeros((vocab,), jnp.float32),
        "layers": [],
    }
    for li in range(layers):
        lk = jax.random.split(keys[4 + li], 4)
        params["layers"].append({
            # Q/K/V projections fused into one (D, 3D) weight.
            "wqkv": norm(lk[0], (hidden, 3 * hidden)),
            "bqkv": jnp.zeros((3 * hidden,), jnp.float32),
            "wo": norm(lk[1], (hidden, hidden)), "bo": jnp.zeros((hidden,), jnp.float32),
            "ln1_g": jnp.ones((hidden,), jnp.float32), "ln1_b": jnp.zeros((hidden,), jnp.float32),
            "w1": norm(lk[2], (hidden, intermediate)), "b1": jnp.zeros((intermediate,), jnp.float32),
            "w2": norm(lk[3], (intermediate, hidden)), "b2": jnp.zeros((hidden,), jnp.float32),
            "ln2_g": jnp.ones((hidden,), jnp.float32), "ln2_b": jnp.zeros((hidden,), jnp.float32),
        })
    return params


def bert_encoder(params, x_ids, *, heads):
    B, S = x_ids.shape
    D = params["word_emb"].shape[1]
    Dh = D // heads

    # Embeddings (gather is plain-JAX glue) + layer norm (kernel).
    h = (jnp.take(params["word_emb"], x_ids, axis=0)
         + params["pos_emb"][:S][None, :, :]
         + params["type_emb"][0][None, None, :])
    h = h.reshape(B * S, D)
    h = pallas_layernorm(h, params["emb_ln_g"], params["emb_ln_b"])

    scale = 1.0 / float(Dh) ** 0.5
    for lp in params["layers"]:
        # --- self attention (fused QKV, no head-split transposes) ---
        qkv = pallas_dense(h, lp["wqkv"], lp["bqkv"])                 # (B*S, 3D)
        ctx = pallas_attention(qkv.reshape(B, S, 3 * D),
                               heads=heads, scale=scale)              # (B, S, D)
        ctx = ctx.reshape(B * S, D)
        # output projection + residual + LayerNorm fused in one kernel
        h = pallas_dense_residual_ln(ctx, lp["wo"], lp["bo"],
                                     h, lp["ln1_g"], lp["ln1_b"])

        # --- feed forward ---
        inter = pallas_dense(h, lp["w1"], lp["b1"], activation="gelu")
        # down projection + residual + LayerNorm fused in one kernel
        h = pallas_dense_residual_ln(inter, lp["w2"], lp["b2"],
                                     h, lp["ln2_g"], lp["ln2_b"])

    return h.reshape(B, S, D)


def language_model_forward(params, x_ids, y=None, *, heads):
    B, S = x_ids.shape
    D = params["word_emb"].shape[1]
    V = params["classify_w"].shape[1]

    seq_out = bert_encoder(params, x_ids, heads=heads)                     # (B, S, D)
    logits = pallas_dense(seq_out.reshape(B * S, D),
                          params["classify_w"], params["classify_b"])      # (B*S, V)
    if y is not None:
        return pallas_cross_entropy(logits, y.reshape(-1))                 # scalar mean CE
    return pallas_softmax(logits).reshape(B, S, V)                         # softmax over vocab


# ----------------------------------------------------------------------------
# Main
# ----------------------------------------------------------------------------

if __name__ == "__main__":
    # Small synthetic config (stands in for bert-base-chinese).
    B, S = 2, 8
    HIDDEN, HEADS, LAYERS, INTER = 32, 4, 2, 64
    VOCAB, MAX_POS = 64, 16

    key = jax.random.PRNGKey(0)
    kp, kx, ky = jax.random.split(key, 3)

    params = init_params(kp, vocab=VOCAB, hidden=HIDDEN, heads=HEADS,
                         layers=LAYERS, intermediate=INTER, max_pos=MAX_POS)

    x = jax.random.randint(kx, (B, S), 0, VOCAB, dtype=jnp.int32)
    y = jax.random.randint(ky, (B, S), 0, VOCAB, dtype=jnp.int32)

    # Inference branch: softmax(classify(bert(x)))
    probs = language_model_forward(params, x, heads=HEADS)
    probs = jax.block_until_ready(probs)
    assert probs.shape == (B, S, VOCAB)

    # Training branch: cross_entropy(y_pred.view(-1, V), y.view(-1))
    loss = language_model_forward(params, x, y, heads=HEADS)
    loss = jax.block_until_ready(loss)
    assert loss.shape == ()

    print("KERNEL_OK")
</pallas_src>

<mosaic_0001>
module attributes {stable_mosaic.version = 11 : i64} {
  func.func @_layernorm_kernel(%arg0: i32, %arg1: memref<16x32xf32, #tpu.memory_space<vmem>>, %arg2: memref<1x32xf32, #tpu.memory_space<vmem>>, %arg3: memref<1x32xf32, #tpu.memory_space<vmem>>, %arg4: memref<16x32xf32, #tpu.memory_space<vmem>>) attributes {dimension_semantics = [#tpu.dimension_semantics<parallel>], iteration_bounds = array<i64: 1>, scalar_prefetch = 0 : i64, scratch_operands = 0 : i64, tpu.core_type = #tpu.core_type<tc>, window_params = [{transform_indices = @transform_0, window_bounds = array<i64: 16, 32>}, {pipeline_mode = #tpu.pipeline_mode<synchronous>, transform_indices = @transform_1, window_bounds = array<i64: 1, 32>}, {pipeline_mode = #tpu.pipeline_mode<synchronous>, transform_indices = @transform_2, window_bounds = array<i64: 1, 32>}, {transform_indices = @transform_3, window_bounds = array<i64: 16, 32>}]} {
    %c0 = arith.constant 0 : index
    %c0_0 = arith.constant 0 : index
    %0 = vector.load %arg1[%c0, %c0_0] : memref<16x32xf32, #tpu.memory_space<vmem>>, vector<16x32xf32>
    %cst = arith.constant dense<0.000000e+00> : vector<16xf32>
    %1 = vector.multi_reduction <add>, %0, %cst [1] : vector<16x32xf32> to vector<16xf32>
    %2 = vector.shape_cast %1 : vector<16xf32> to vector<16x1xf32>
    %cst_1 = arith.constant 3.200000e+01 : f32
    %3 = vector.broadcast %cst_1 : f32 to vector<16x1xf32>
    %4 = arith.divf %2, %3 : vector<16x1xf32>
    %5 = arith.mulf %0, %0 : vector<16x32xf32>
    %cst_2 = arith.constant dense<0.000000e+00> : vector<16xf32>
    %6 = vector.multi_reduction <add>, %5, %cst_2 [1] : vector<16x32xf32> to vector<16xf32>
    %7 = vector.shape_cast %6 : vector<16xf32> to vector<16x1xf32>
    %cst_3 = arith.constant 3.200000e+01 : f32
    %8 = vector.broadcast %cst_3 : f32 to vector<16x1xf32>
    %9 = arith.divf %7, %8 : vector<16x1xf32>
    %10 = arith.mulf %4, %4 : vector<16x1xf32>
    %11 = arith.subf %9, %10 : vector<16x1xf32>
    %cst_4 = arith.constant 0.000000e+00 : f32
    %12 = vector.broadcast %cst_4 : f32 to vector<16x1xf32>
    %13 = arith.maximumf %11, %12 : vector<16x1xf32>
    %cst_5 = arith.constant 9.99999996E-13 : f32
    %14 = vector.broadcast %cst_5 : f32 to vector<16x1xf32>
    %15 = arith.addf %13, %14 : vector<16x1xf32>
    %16 = math.rsqrt %15 : vector<16x1xf32>
    %17 = vector.broadcast %4 : vector<16x1xf32> to vector<16x32xf32>
    %18 = arith.subf %0, %17 : vector<16x32xf32>
    %19 = vector.broadcast %16 : vector<16x1xf32> to vector<16x32xf32>
    %20 = arith.mulf %18, %19 : vector<16x32xf32>
    %c0_6 = arith.constant 0 : index
    %c0_7 = arith.constant 0 : index
    %21 = vector.load %arg2[%c0_6, %c0_7] : memref<1x32xf32, #tpu.memory_space<vmem>>, vector<1x32xf32>
    %22 = vector.broadcast %21 : vector<1x32xf32> to vector<16x32xf32>
    %23 = arith.mulf %20, %22 : vector<16x32xf32>
    %c0_8 = arith.constant 0 : index
    %c0_9 = arith.constant 0 : index
    %24 = vector.load %arg3[%c0_8, %c0_9] : memref<1x32xf32, #tpu.memory_space<vmem>>, vector<1x32xf32>
    %25 = vector.broadcast %24 : vector<1x32xf32> to vector<16x32xf32>
    %26 = arith.addf %23, %25 : vector<16x32xf32>
    %c0_10 = arith.constant 0 : index
    %c0_11 = arith.constant 0 : index
    %27 = vector.load %arg4[%c0_10, %c0_11] : memref<16x32xf32, #tpu.memory_space<vmem>>, vector<16x32xf32>
    tpu.vector_store %arg4[%c0_10, %c0_11], %26 {strides = array<i32>} : memref<16x32xf32, #tpu.memory_space<vmem>>, vector<16x32xf32>,
    return
  }
  func.func @transform_0(%arg0: i32) -> (i32, i32) {
    %c0_i32 = arith.constant 0 : i32
    %c0_i32_0 = arith.constant 0 : i32
    return %arg0, %c0_i32 : i32, i32
  }
  func.func @transform_1(%arg0: i32) -> (i32, i32) {
    %c0_i32 = arith.constant 0 : i32
    %c0_i32_0 = arith.constant 0 : i32
    %c0_i32_1 = arith.constant 0 : i32
    return %c0_i32, %c0_i32_0 : i32, i32
  }
  func.func @transform_2(%arg0: i32) -> (i32, i32) {
    %c0_i32 = arith.constant 0 : i32
    %c0_i32_0 = arith.constant 0 : i32
    %c0_i32_1 = arith.constant 0 : i32
    return %c0_i32, %c0_i32_0 : i32, i32
  }
  func.func @transform_3(%arg0: i32) -> (i32, i32) {
    %c0_i32 = arith.constant 0 : i32
    %c0_i32_0 = arith.constant 0 : i32
    return %arg0, %c0_i32 : i32, i32
  }
}

</mosaic_0001>

<bundles_post_ra>
// kernel: tpu_custom_call.1
= control target key start
LH: loop header
LB: loop body
LE: loop exit
PB: predicated region body
PF: predicated region fallthrough
CT: control target
= control target key end

     0   :  { %8 = vsyncpa [#allocation3], 0  ;;  %s226_s0 = inlined_call_operand.hbm [shape: f32[16,32], index: 0, kind: input, shape index: {}]   ;;  %s227_s1 = inlined_call_operand.vmem [shape: f32[1,32], index: 1, kind: input, shape index: {}]   ;;  %s228_s2 = inlined_call_operand.vmem [shape: f32[1,32], index: 2, kind: input, shape index: {}]   ;;  %s229_s3 = inlined_call_operand.hbm [shape: f32[16,32], index: 3, kind: output, shape index: {}]  }
   0x1   :  { %9 = vsyncpa [#allocation4], 0  ;;  %s160_s12 = smov [#allocation2]   ;;  %s112_s16 = scalar_lea.hbm %s226_s0, 256 }
   0x2   :  { %s15_s13 = sshll.u32 %s160_s12, 4  ;;  %p113_p0 = scmp.ne.s32.totalorder %s226_s0, %s112_s16  ;;  %s16_s13 = int_to_ptr.vmem [resolvable:$true] %s15_s13 }
   0x3   :  { %p116_p1 = scmp.lt.u32.totalorder %s112_s16, %s226_s0 }
   0x5   :  { %p118_p2 = pnand %p116_p1, %p113_p0 }
   0x7   :  { %121 = shalt.err (!%p118_p2)
}
   0x8   :  { %s122_s21 = scalar_lea.vmem %s16_s13, 256  ;;  %p127_p4 = scmp.lt.s32.totalorder %s16_s13, %s16_s13 }
   0x9   :  { %p123_p3 = scmp.ne.s32.totalorder %s16_s13, %s122_s21  ;;  %p128_p5 = scmp.lt.s32.totalorder %s122_s21, %s122_s21 }
   0xb   :  { %p129_p6 = por %p128_p5, %p127_p4 }
   0xd   :  { %p130_p7 = pnand %p129_p6, %p123_p3 }
   0xf   :  { %133 = shalt.err (!%p130_p7)
}
  0x10   :  { %s161_s22 = smov 128   ;;  %s162_s23 = smov 8  }
  0x11   :  { %21 = dma.hbm_to_vmem [thread:$0]  %s226_s0, 256, %s16_s13, [#allocation3], %s161_s22, %s161_s22, %s162_s23  }
  0x12   :  { %156 = dma.done.wait [#allocation3], 256  }
  0x13   :  { %157 = vsyncadd [#allocation3], 4294967040  ;;  %vm31_vm0 = vcmask 261120   ;;  %v29_v0 = vld [vmem:[#allocation2] sm:$0xff]  ;;  %v30_v1 = vld [vmem:[#allocation2 + $0x8] sm:$0xff]  ;;  %s163_s29 = smov [#allocation5]  }
  0x14   :  { %v32_v2 = vsel %vm31_vm0, %v29_v0, 0.0  ;;  %v41_v3 = vmul.f32 %v29_v0, %v29_v0  ;;  %v42_v4 = vmul.f32 %v30_v1, %v30_v1  ;;  %v35_v6 = vsel %vm31_vm0, %v30_v1, 0.0  ;;  %v102_v26 = vld [vmem:[%s227_s1] ss:$0 sm:$0xff]  ;;  %s90_s30 = sshll.u32 %s163_s29, 4  ;;  %s91_s30 = int_to_ptr.vmem [resolvable:$true] %s90_s30 }
  0x15   :  { %33 = vadd.xlane.f32.xlu0 %v32_v2  ;;  %v103_v28 = vld [vmem:[%s228_s2] ss:$0 sm:$0xff]  ;;  %s134_s1 = scalar_lea.vmem %s91_s30, 256  ;;  %p139_p9 = scmp.lt.s32.totalorder %s91_s30, %s91_s30 }
  0x16   :  { %v43_v5 = vsel %vm31_vm0, %v41_v3, 0.0  ;;  %v46_v7 = vsel %vm31_vm0, %v42_v4, 0.0  ;;  %p135_p8 = scmp.ne.s32.totalorder %s91_s30, %s134_s1  ;;  %p140_p10 = scmp.lt.s32.totalorder %s134_s1, %s134_s1 }
  0x17   :  { %44 = vadd.xlane.f32.xlu1 %v43_v5 }
  0x18   :  { %p141_p11 = por %p140_p10, %p139_p9 }
  0x19   :  { %36 = vadd.xlane.f32.xlu0 %v35_v6 }
  0x1a   :  { %p142_p12 = pnand %p141_p11, %p135_p8 }
  0x1b   :  { %47 = vadd.xlane.f32.xlu1 %v46_v7 }
  0xa2   :  { %v34_v8 = vpop.xlane.xlu0 %33 }
  0xa3   :  { %v39_v9 = vmul.f32 0.03125, %v34_v8 }
  0xa4   :  { %v45_v10 = vpop.xlane.xlu1 %44 }
  0xa5   :  { %v51_v11 = vmul.f32 %v39_v9, %v39_v9  ;;  %v49_v12 = vmul.f32 0.03125, %v45_v10  ;;  %v61_v24 = vsub.f32 %v29_v0, %v39_v9 }
  0xa6   :  { %v37_v13 = vpop.xlane.xlu0 %36 }
  0xa7   :  { %v53_v14 = vsub.f32 %v49_v12, %v51_v11  ;;  %v40_v15 = vmul.f32 0.03125, %v37_v13 }
  0xa8   :  { %v48_v16 = vpop.xlane.xlu1 %47 }
  0xa9   :  { %v55_v17 = vmax.f32 %v53_v14, 0.0  ;;  %v52_v18 = vmul.f32 %v40_v15, %v40_v15  ;;  %v50_v19 = vmul.f32 0.03125, %v48_v16  ;;  %v62_v29 = vsub.f32 %v30_v1, %v40_v15 }
  0xab   :  { %v57_v20 = vadd.f32 1e-12, %v55_v17  ;;  %v54_v21 = vsub.f32 %v50_v19, %v52_v18 }
  0xad   :  { %108 = vrsqrt.f32 %v57_v20  ;;  %v56_v22 = vmax.f32 %v54_v21, 0.0 }
  0xaf   :  { %v58_v23 = vadd.f32 1e-12, %v56_v22 }
  0xb1   :  { %110 = vrsqrt.f32 %v58_v23 }
  0xb7   :  { %v109_v25 = vpop.eup %108 }
  0xb8   :  { %v63_v27 = vmul.f32 %v109_v25, %v61_v24 }
  0xba   :  { %v72_v30 = vmul.f32 %v102_v26, %v63_v27 }
  0xbb   :  { %v111_v31 = vpop.eup %110 }
  0xbc   :  { %v64_v32 = vmul.f32 %v111_v31, %v62_v29  ;;  %v81_v33 = vadd.f32 %v103_v28, %v72_v30 }
  0xbe   :  { %v73_v34 = vmul.f32 %v102_v26, %v64_v32  ;;  %83 = vst.msk [vmem:[#allocation5] sm:$0xff] %vm31_vm0, %v81_v33 }
  0xc0   :  { %v82_v35 = vadd.f32 %v103_v28, %v73_v34 }
  0xc2   :  { %84 = vst.msk [vmem:[#allocation5 + $0x8] sm:$0xff] %vm31_vm0, %v82_v35 }
  0xc3   :  { %145 = shalt.err (!%p142_p12)
}
  0xc4   :  { %s146_s5 = scalar_lea.hbm %s229_s3, 256 }
  0xc5   :  { %p147_p13 = scmp.ne.s32.totalorder %s229_s3, %s146_s5  ;;  %p150_p0 = scmp.lt.u32.totalorder %s146_s5, %s229_s3 }
  0xc7   :  { %p152_p1 = pnand %p150_p0, %p147_p13 }
  0xc9   :  { %155 = shalt.err (!%p152_p1)
}
  0xca   :  { %96 = dma.vmem_to_hbm [thread:$0]  %s91_s30, 256, %s229_s3, [#allocation4], %s161_s22, %s161_s22, %s162_s23  }
  0xcb   :  { %158 = dma.done.wait [#allocation4], 256  }
  0xcc   :  { %159 = vsyncadd [#allocation4], 4294967040 }
  0xcd   :  { %100 = vsyncpa [#allocation3], 1 }
  0xce   :  { %101 = vsyncpa [#allocation4], 1 }

</bundles_post_ra>
